<compile_context>
chip_gen: v7x
topology: tpu7x:2x2x1
jax: 0.10.0
libtpu: 0.0.40
codegen_flags: <defaults>
</compile_context>

<pallas_src>
import math
import functools

import jax
import jax.numpy as jnp
from jax import lax
from jax.experimental import pallas as pl
from jax.experimental.pallas import tpu as pltpu


def _round_up(x, m):
    return ((x + m - 1) // m) * m


def _generator_mapping_kernel(x_ref, w0_ref, wr_ref, b_ref, o_ref, *, scales):
    """x_ref: (bn, C_in); w0_ref: (C_in, C_out); wr_ref: (3, C_out, C_out);
    b_ref: (4, C_out); o_ref: (bn, C_out).  Weights are pre-transposed, so the
    matmul is h @ W with no in-kernel transpose."""
    x = x_ref[...].astype(jnp.float32)

    # PixelNorm over the feature dim, fused with layer-0 equalized-LR scale:
    # x * (s0 * rsqrt(mean(x^2, dim=1) + 1e-8))
    x = x * (scales[0] * lax.rsqrt(jnp.mean(x * x, axis=1, keepdims=True) + 1e-8))

    def lin_lrelu(h, w, b):
        y = jnp.dot(h, w, preferred_element_type=jnp.float32) + b
        # LeakyReLU(0.2): slope < 1 so max(y, 0.2*y) is exact.
        return jnp.maximum(y, 0.2 * y)

    # Layer 0 (scale already folded into the pixel-norm above).
    h = lin_lrelu(x,
                  w0_ref[...].astype(jnp.float32),
                  b_ref[0:1, :].astype(jnp.float32))

    # Layers 1..3: fold scale into the small activation, not the weight tile.
    for l in range(3):
        h = lin_lrelu(h * scales[l + 1],
                      wr_ref[l].astype(jnp.float32),
                      b_ref[l + 1:l + 2, :].astype(jnp.float32))

    o_ref[...] = h.astype(o_ref.dtype)


def generator_mapping(x, params):
    """x: (N, C_in) float32. params: list of 4 (weight (out,in), bias (out,)).
    Returns (N, C_out, 6, 2) like the PyTorch module."""
    n, c_in = x.shape
    c_out = params[0][0].shape[0]

    # Equalized-LR scales: sqrt(2 / fan_in) per layer.
    scales = tuple(float(math.sqrt(2.0 / w.shape[1])) for (w, _) in params)

    # Pre-transpose weights once in the wrapper: (out, in) -> (in, out).
    w0_t = jnp.transpose(params[0][0])                               # (C_in, C_out)
    wr_t = jnp.stack([jnp.transpose(w) for (w, _) in params[1:]], 0) # (3, C_out, C_out)
    b_all = jnp.stack([b for (_, b) in params], 0)                   # (4, C_out)

    # Batch tiling: pad N to a sublane multiple and grid over row-blocks so
    # large batches shard across TensorCores ("parallel"); tiny N = 1 block.
    block_n = min(256, _round_up(n, 8))
    n_pad = _round_up(n, block_n)
    x_p = x if n_pad == n else jnp.pad(x, ((0, n_pad - n), (0, 0)))

    kernel = functools.partial(_generator_mapping_kernel, scales=scales)

    h = pl.pallas_call(
        kernel,
        out_shape=jax.ShapeDtypeStruct((n_pad, c_out), jnp.float32),
        grid=(n_pad // block_n,),
        in_specs=[
            pl.BlockSpec((block_n, c_in), lambda i: (i, 0)),
            pl.BlockSpec((c_in, c_out), lambda i: (0, 0)),
            pl.BlockSpec((3, c_out, c_out), lambda i: (0, 0, 0)),
            pl.BlockSpec((4, c_out), lambda i: (0, 0)),
        ],
        out_specs=pl.BlockSpec((block_n, c_out), lambda i: (i, 0)),
        compiler_params=pltpu.CompilerParams(
            dimension_semantics=("parallel",)),
    )(x_p, w0_t, wr_t, b_all)

    h = h[:n]
    # x.unsqueeze(2).unsqueeze(3).expand(-1, -1, 6, 2) -- pure broadcast, done
    # outside the kernel so the lane-dense (N, C_out) slab stays the
    # interchange format for any downstream consumer.
    return jnp.broadcast_to(h[:, :, None, None], (n, c_out, 6, 2))


def _reference(x, params):
    """Pure-JAX reference mirroring the PyTorch forward."""
    h = x * lax.rsqrt(jnp.mean(x * x, axis=1, keepdims=True) + 1e-8)
    for (w, b) in params:
        scale = math.sqrt(2.0 / w.shape[1])
        y = h @ (w * scale).T + b
        h = jnp.where(y >= 0.0, y, 0.2 * y)
    return jnp.broadcast_to(h[:, :, None, None], h.shape + (6, 2))


def _make_params(key, c_in, c_out):
    k0, k1, k2, k3 = jax.random.split(key, 4)
    dims = [(c_out, c_in), (c_out, c_out), (c_out, c_out), (c_out, c_out)]
    keys = [k0, k1, k2, k3]
    # LinearEqualized init: weight ~ N(0,1), bias = 0.
    return [(jax.random.normal(k, d, dtype=jnp.float32),
             jnp.zeros((d[0],), jnp.float32)) for k, d in zip(keys, dims)]


if __name__ == "__main__":
    key = jax.random.PRNGKey(0)
    kx, kp, kx2, kp2 = jax.random.split(key, 4)

    # Main test: latent dim 32 -> style dim 32, batch 8.
    N, C_IN, C_OUT = 8, 32, 32
    x = jax.random.normal(kx, (N, C_IN), dtype=jnp.float32)
    params = _make_params(kp, C_IN, C_OUT)

    out = jax.block_until_ready(generator_mapping(x, params))
    assert out.shape == (N, C_OUT, 6, 2), out.shape
    ref = jax.block_until_ready(_reference(x, params))
    assert jnp.allclose(out, ref, atol=1e-5, rtol=1e-5), "mismatch vs reference"

    # Secondary test: in != out channels and a batch needing padding.
    N2, C_IN2, C_OUT2 = 5, 16, 32
    x2 = jax.random.normal(kx2, (N2, C_IN2), dtype=jnp.float32)
    params2 = _make_params(kp2, C_IN2, C_OUT2)

    out2 = jax.block_until_ready(generator_mapping(x2, params2))
    assert out2.shape == (N2, C_OUT2, 6, 2), out2.shape
    ref2 = jax.block_until_ready(_reference(x2, params2))
    assert jnp.allclose(out2, ref2, atol=1e-5, rtol=1e-5), "mismatch vs reference (test 2)"

    print("KERNEL_OK")
</pallas_src>

<mosaic_0001>
module attributes {stable_mosaic.version = 11 : i64} {
  func.func @_generator_mapping_kernel(%arg0: i32, %arg1: memref<8x32xf32, #tpu.memory_space<vmem>>, %arg2: memref<32x32xf32, #tpu.memory_space<vmem>>, %arg3: memref<3x32x32xf32, #tpu.memory_space<vmem>>, %arg4: memref<4x32xf32, #tpu.memory_space<vmem>>, %arg5: memref<8x32xf32, #tpu.memory_space<vmem>>) attributes {dimension_semantics = [#tpu.dimension_semantics<parallel>], iteration_bounds = array<i64: 1>, scalar_prefetch = 0 : i64, scratch_operands = 0 : i64, tpu.core_type = #tpu.core_type<tc>, window_params = [{transform_indices = @transform_0, window_bounds = array<i64: 8, 32>}, {pipeline_mode = #tpu.pipeline_mode<synchronous>, transform_indices = @transform_1, window_bounds = array<i64: 32, 32>}, {pipeline_mode = #tpu.pipeline_mode<synchronous>, transform_indices = @transform_2, window_bounds = array<i64: 3, 32, 32>}, {pipeline_mode = #tpu.pipeline_mode<synchronous>, transform_indices = @transform_3, window_bounds = array<i64: 4, 32>}, {transform_indices = @transform_4, window_bounds = array<i64: 8, 32>}]} {
    %c0 = arith.constant 0 : index
    %c0_0 = arith.constant 0 : index
    %0 = vector.load %arg1[%c0, %c0_0] : memref<8x32xf32, #tpu.memory_space<vmem>>, vector<8x32xf32>
    %1 = arith.mulf %0, %0 : vector<8x32xf32>
    %cst = arith.constant dense<0.000000e+00> : vector<8xf32>
    %2 = vector.multi_reduction <add>, %1, %cst [1] : vector<8x32xf32> to vector<8xf32>
    %3 = vector.shape_cast %2 : vector<8xf32> to vector<8x1xf32>
    %cst_1 = arith.constant 3.200000e+01 : f32
    %4 = vector.broadcast %cst_1 : f32 to vector<8x1xf32>
    %5 = arith.divf %3, %4 : vector<8x1xf32>
    %cst_2 = arith.constant 9.99999993E-9 : f32
    %6 = vector.broadcast %cst_2 : f32 to vector<8x1xf32>
    %7 = arith.addf %5, %6 : vector<8x1xf32>
    %8 = math.rsqrt %7 : vector<8x1xf32>
    %cst_3 = arith.constant 2.500000e-01 : f32
    %9 = vector.broadcast %cst_3 : f32 to vector<8x1xf32>
    %10 = arith.mulf %9, %8 : vector<8x1xf32>
    %11 = vector.broadcast %10 : vector<8x1xf32> to vector<8x32xf32>
    %12 = arith.mulf %0, %11 : vector<8x32xf32>
    %c0_4 = arith.constant 0 : index
    %c0_5 = arith.constant 0 : index
    %13 = vector.load %arg2[%c0_4, %c0_5] : memref<32x32xf32, #tpu.memory_space<vmem>>, vector<32x32xf32>
    %c0_6 = arith.constant 0 : index
    %c0_7 = arith.constant 0 : index
    %14 = vector.load %arg4[%c0_6, %c0_7] : memref<4x32xf32, #tpu.memory_space<vmem>>, vector<1x32xf32>
    %cst_8 = arith.constant dense<0.000000e+00> : vector<8x32xf32>
    %15 = tpu.matmul %12, %13, %cst_8 {dimension_numbers = #tpu.dot_dimension_numbers<[1], [0], [0], [1], [0, 0, 1, 1], [], []>} : vector<8x32xf32>, vector<32x32xf32>, vector<8x32xf32> -> vector<8x32xf32>
    %16 = vector.broadcast %14 : vector<1x32xf32> to vector<8x32xf32>
    %17 = arith.addf %15, %16 : vector<8x32xf32>
    %cst_9 = arith.constant 2.000000e-01 : f32
    %18 = vector.broadcast %cst_9 : f32 to vector<8x32xf32>
    %19 = arith.mulf %18, %17 : vector<8x32xf32>
    %20 = arith.maximumf %17, %19 : vector<8x32xf32>
    %cst_10 = arith.constant 2.500000e-01 : f32
    %21 = vector.broadcast %cst_10 : f32 to vector<8x32xf32>
    %22 = arith.mulf %20, %21 : vector<8x32xf32>
    %c0_11 = arith.constant 0 : index
    %c0_12 = arith.constant 0 : index
    %c0_13 = arith.constant 0 : index
    %23 = vector.load %arg3[%c0_11, %c0_12, %c0_13] : memref<3x32x32xf32, #tpu.memory_space<vmem>>, vector<1x32x32xf32>
    %24 = vector.shape_cast %23 : vector<1x32x32xf32> to vector<32x32xf32>
    %c1 = arith.constant 1 : index
    %c0_14 = arith.constant 0 : index
    %25 = vector.load %arg4[%c1, %c0_14] : memref<4x32xf32, #tpu.memory_space<vmem>>, vector<1x32xf32>
    %cst_15 = arith.constant dense<0.000000e+00> : vector<8x32xf32>
    %26 = tpu.matmul %22, %24, %cst_15 {dimension_numbers = #tpu.dot_dimension_numbers<[1], [0], [0], [1], [0, 0, 1, 1], [], []>} : vector<8x32xf32>, vector<32x32xf32>, vector<8x32xf32> -> vector<8x32xf32>
    %27 = vector.broadcast %25 : vector<1x32xf32> to vector<8x32xf32>
    %28 = arith.addf %26, %27 : vector<8x32xf32>
    %cst_16 = arith.constant 2.000000e-01 : f32
    %29 = vector.broadcast %cst_16 : f32 to vector<8x32xf32>
    %30 = arith.mulf %29, %28 : vector<8x32xf32>
    %31 = arith.maximumf %28, %30 : vector<8x32xf32>
    %cst_17 = arith.constant 2.500000e-01 : f32
    %32 = vector.broadcast %cst_17 : f32 to vector<8x32xf32>
    %33 = arith.mulf %31, %32 : vector<8x32xf32>
    %c1_18 = arith.constant 1 : index
    %c0_19 = arith.constant 0 : index
    %c0_20 = arith.constant 0 : index
    %34 = vector.load %arg3[%c1_18, %c0_19, %c0_20] : memref<3x32x32xf32, #tpu.memory_space<vmem>>, vector<1x32x32xf32>
    %35 = vector.shape_cast %34 : vector<1x32x32xf32> to vector<32x32xf32>
    %c2 = arith.constant 2 : index
    %c0_21 = arith.constant 0 : index
    %36 = vector.load %arg4[%c2, %c0_21] : memref<4x32xf32, #tpu.memory_space<vmem>>, vector<1x32xf32>
    %cst_22 = arith.constant dense<0.000000e+00> : vector<8x32xf32>
    %37 = tpu.matmul %33, %35, %cst_22 {dimension_numbers = #tpu.dot_dimension_numbers<[1], [0], [0], [1], [0, 0, 1, 1], [], []>} : vector<8x32xf32>, vector<32x32xf32>, vector<8x32xf32> -> vector<8x32xf32>
    %38 = vector.broadcast %36 : vector<1x32xf32> to vector<8x32xf32>
    %39 = arith.addf %37, %38 : vector<8x32xf32>
    %cst_23 = arith.constant 2.000000e-01 : f32
    %40 = vector.broadcast %cst_23 : f32 to vector<8x32xf32>
    %41 = arith.mulf %40, %39 : vector<8x32xf32>
    %42 = arith.maximumf %39, %41 : vector<8x32xf32>
    %cst_24 = arith.constant 2.500000e-01 : f32
    %43 = vector.broadcast %cst_24 : f32 to vector<8x32xf32>
    %44 = arith.mulf %42, %43 : vector<8x32xf32>
    %c2_25 = arith.constant 2 : index
    %c0_26 = arith.constant 0 : index
    %c0_27 = arith.constant 0 : index
    %45 = vector.load %arg3[%c2_25, %c0_26, %c0_27] : memref<3x32x32xf32, #tpu.memory_space<vmem>>, vector<1x32x32xf32>
    %46 = vector.shape_cast %45 : vector<1x32x32xf32> to vector<32x32xf32>
    %c3 = arith.constant 3 : index
    %c0_28 = arith.constant 0 : index
    %47 = vector.load %arg4[%c3, %c0_28] : memref<4x32xf32, #tpu.memory_space<vmem>>, vector<1x32xf32>
    %cst_29 = arith.constant dense<0.000000e+00> : vector<8x32xf32>
    %48 = tpu.matmul %44, %46, %cst_29 {dimension_numbers = #tpu.dot_dimension_numbers<[1], [0], [0], [1], [0, 0, 1, 1], [], []>} : vector<8x32xf32>, vector<32x32xf32>, vector<8x32xf32> -> vector<8x32xf32>
    %49 = vector.broadcast %47 : vector<1x32xf32> to vector<8x32xf32>
    %50 = arith.addf %48, %49 : vector<8x32xf32>
    %cst_30 = arith.constant 2.000000e-01 : f32
    %51 = vector.broadcast %cst_30 : f32 to vector<8x32xf32>
    %52 = arith.mulf %51, %50 : vector<8x32xf32>
    %53 = arith.maximumf %50, %52 : vector<8x32xf32>
    %c0_31 = arith.constant 0 : index
    %c0_32 = arith.constant 0 : index
    %54 = vector.load %arg5[%c0_31, %c0_32] : memref<8x32xf32, #tpu.memory_space<vmem>>, vector<8x32xf32>
    tpu.vector_store %arg5[%c0_31, %c0_32], %53 {strides = array<i32>} : memref<8x32xf32, #tpu.memory_space<vmem>>, vector<8x32xf32>,
    return
  }
  func.func @transform_0(%arg0: i32) -> (i32, i32) {
    %c0_i32 = arith.constant 0 : i32
    %c0_i32_0 = arith.constant 0 : i32
    return %arg0, %c0_i32 : i32, i32
  }
  func.func @transform_1(%arg0: i32) -> (i32, i32) {
    %c0_i32 = arith.constant 0 : i32
    %c0_i32_0 = arith.constant 0 : i32
    %c0_i32_1 = arith.constant 0 : i32
    return %c0_i32, %c0_i32_0 : i32, i32
  }
  func.func @transform_2(%arg0: i32) -> (i32, i32, i32) {
    %c0_i32 = arith.constant 0 : i32
    %c0_i32_0 = arith.constant 0 : i32
    %c0_i32_1 = arith.constant 0 : i32
    %c0_i32_2 = arith.constant 0 : i32
    return %c0_i32, %c0_i32_0, %c0_i32_1 : i32, i32, i32
  }
  func.func @transform_3(%arg0: i32) -> (i32, i32) {
    %c0_i32 = arith.constant 0 : i32
    %c0_i32_0 = arith.constant 0 : i32
    %c0_i32_1 = arith.constant 0 : i32
    return %c0_i32, %c0_i32_0 : i32, i32
  }
  func.func @transform_4(%arg0: i32) -> (i32, i32) {
    %c0_i32 = arith.constant 0 : i32
    %c0_i32_0 = arith.constant 0 : i32
    return %arg0, %c0_i32 : i32, i32
  }
}

</mosaic_0001>

<bundles_post_ra>
// kernel: tpu_custom_call.1
= control target key start
LH: loop header
LB: loop body
LE: loop exit
PB: predicated region body
PF: predicated region fallthrough
CT: control target
= control target key end

     0   :  { %9 = vsyncpa [#allocation3], 0  ;;  %s738_s0 = inlined_call_operand.hbm [shape: f32[8,32], index: 0, kind: input, shape index: {}]   ;;  %s739_s1 = inlined_call_operand.hbm [shape: f32[32,32], index: 1, kind: input, shape index: {}]   ;;  %s740_s2 = inlined_call_operand.hbm [shape: f32[3,32,32], index: 2, kind: input, shape index: {}]   ;;  %s741_s3 = inlined_call_operand.vmem [shape: f32[4,32], index: 3, kind: input, shape index: {}]   ;;  %s742_s4 = inlined_call_operand.hbm [shape: f32[8,32], index: 4, kind: output, shape index: {}]  }
   0x1   :  { %10 = vsyncpa [#allocation6], 0 }
   0x2   :  { %11 = vsyncpa [#allocation4], 0  ;;  %s628_s15 = smov [#allocation5]   ;;  %s534_s19 = scalar_lea.hbm %s739_s1, 512 }
   0x3   :  { %s27_s16 = sshll.u32 %s628_s15, 4  ;;  %p535_p0 = scmp.ne.s32.totalorder %s739_s1, %s534_s19  ;;  %s28_s16 = int_to_ptr.vmem [resolvable:$true] %s27_s16 }
   0x4   :  { %p538_p1 = scmp.lt.u32.totalorder %s534_s19, %s739_s1 }
   0x6   :  { %p540_p2 = pnand %p538_p1, %p535_p0 }
   0x8   :  { %543 = shalt.err (!%p540_p2)
}
   0x9   :  { %s544_s24 = scalar_lea.vmem %s28_s16, 512  ;;  %p549_p4 = scmp.lt.s32.totalorder %s28_s16, %s28_s16 }
   0xa   :  { %p545_p3 = scmp.ne.s32.totalorder %s28_s16, %s544_s24  ;;  %p550_p5 = scmp.lt.s32.totalorder %s544_s24, %s544_s24 }
   0xc   :  { %p551_p6 = por %p550_p5, %p549_p4 }
   0xe   :  { %p552_p7 = pnand %p551_p6, %p545_p3 }
  0x10   :  { %555 = shalt.err (!%p552_p7)
}
  0x11   :  { %s629_s25 = smov 128   ;;  %s630_s26 = smov 8  }
  0x12   :  { %33 = dma.hbm_to_vmem [thread:$0]  %s739_s1, 512, %s28_s16, [#allocation6], %s629_s25, %s629_s25, %s630_s26  }
  0x13   :  { %s631_s29 = smov [#allocation2]   ;;  %s632_s5 = smov [#allocation7]  }
  0x14   :  { %s18_s30 = sshll.u32 %s631_s29, 4  ;;  %s39_s6 = sshll.u32 %s632_s5, 4  ;;  %s19_s30 = int_to_ptr.vmem [resolvable:$true] %s18_s30  ;;  %s40_s6 = int_to_ptr.vmem [resolvable:$true] %s39_s6 }
  0x15   :  { %s556_s9 = scalar_lea.hbm %s738_s0, 128 }
  0x16   :  { %p557_p8 = scmp.ne.s32.totalorder %s738_s0, %s556_s9  ;;  %p560_p9 = scmp.lt.u32.totalorder %s556_s9, %s738_s0 }
  0x18   :  { %p562_p10 = pnand %p560_p9, %p557_p8 }
  0x1a   :  { %565 = shalt.err (!%p562_p10)
}
  0x1b   :  { %s566_s1 = scalar_lea.vmem %s19_s30, 128  ;;  %p571_p12 = scmp.lt.s32.totalorder %s19_s30, %s19_s30 }
  0x1c   :  { %p567_p11 = scmp.ne.s32.totalorder %s19_s30, %s566_s1  ;;  %p572_p13 = scmp.lt.s32.totalorder %s566_s1, %s566_s1 }
  0x1e   :  { %p573_p0 = por %p572_p13, %p571_p12 }
  0x20   :  { %p574_p1 = pnand %p573_p0, %p567_p11 }
  0x22   :  { %577 = shalt.err (!%p574_p1)
}
  0x23   :  { %21 = dma.hbm_to_vmem [thread:$0]  %s738_s0, 128, %s19_s30, [#allocation3]  }
  0x24   :  { %s578_s18 = scalar_lea.hbm %s740_s2, 1536 }
  0x25   :  { %p579_p2 = scmp.ne.s32.totalorder %s740_s2, %s578_s18  ;;  %p582_p3 = scmp.lt.u32.totalorder %s578_s18, %s740_s2 }
  0x27   :  { %p584_p4 = pnand %p582_p3, %p579_p2 }
  0x29   :  { %587 = shalt.err (!%p584_p4)
}
  0x2a   :  { %s588_s23 = scalar_lea.vmem %s40_s6, 1536  ;;  %p593_p6 = scmp.lt.s32.totalorder %s40_s6, %s40_s6 }
  0x2b   :  { %p589_p5 = scmp.ne.s32.totalorder %s40_s6, %s588_s23  ;;  %p594_p7 = scmp.lt.s32.totalorder %s588_s23, %s588_s23 }
  0x2d   :  { %p595_p8 = por %p594_p7, %p593_p6 }
  0x2f   :  { %p596_p9 = pnand %p595_p8, %p589_p5 }
  0x31   :  { %599 = shalt.err (!%p596_p9)
}
  0x32   :  { %45 = dma.hbm_to_vmem [thread:$0]  %s740_s2, 1536, %s40_s6, [#allocation6], %s629_s25, %s629_s25, %s630_s26  }
  0x33   :  { %622 = dma.done.wait [#allocation3], 128  }
  0x34   :  { %623 = vsyncadd [#allocation3], 4294967168 }
  0x35   :  { %624 = dma.done.wait [#allocation6], 2048  }
  0x36   :  { %625 = vsyncadd [#allocation6], 4294965248  ;;  %v57_v0 = vld [vmem:[#allocation2] sm:$0xff]  ;;  %vm59_vm0 = vcmask 261120   ;;  %v69_v3 = vld [vmem:[#allocation5] sm:$0xff]  ;;  %v633_v6 = vmov 0.0|0.0  }
  0x37   :  { %v58_v1 = vmul.f32 %v57_v0, %v57_v0  ;;  %v70_v4 = vld [vmem:[#allocation5 + $0x8] sm:$0xff]  ;;  %499 = vmatprep.subr.bf16.mxu0 %v633_v6  ;;  %505 = vmatprep.subr.bf16.mxu1 %v633_v6  ;;  %v71_v7 = vld [vmem:[#allocation5 + $0x10] sm:$0xff]  ;;  %v72_v8 = vld [vmem:[#allocation5 + $0x18] sm:$0xff]  ;;  %vm634_vm1 = vmmov 0   ;;  %v635_v10 = vmov 0.0   ;;  %s636_s6 = smov [#allocation8]  }
  0x38   :  { %v500_v5 = vpack.c.bf16 %v70_v4, %v69_v3  ;;  %v503_v9 = vpack.c.bf16 %v72_v8, %v71_v7  ;;  %463 = vmatprep.mubr.msk.f32.mxu0 %vm634_vm1, %v635_v10  ;;  %474 = vmatprep.mubr.msk.f32.mxu1 %vm634_vm1, %v635_v10  ;;  %v154_v17 = vld [vmem:[#allocation7] sm:$0xff]  ;;  %v155_v18 = vld [vmem:[#allocation7 + $0x8] sm:$0xff]  ;;  %v156_v20 = vld [vmem:[#allocation7 + $0x10] sm:$0xff]  ;;  %s417_s7 = sshll.u32 %s636_s6, 4  ;;  %s418_s7 = int_to_ptr.vmem [resolvable:$true] %s417_s7 }
  0x39   :  { %v60_v2 = vsel %vm59_vm0, %v58_v1, 0.0  ;;  %v506_v19 = vpack.c.bf16 %v155_v18, %v154_v17  ;;  %v157_v21 = vld [vmem:[#allocation7 + $0x18] sm:$0xff]  ;;  %v240_v30 = vld [vmem:[#allocation7 + $0x20] sm:$0xff]  ;;  %v241_v31 = vld [vmem:[#allocation7 + $0x28] sm:$0xff]  ;;  %s600_s8 = scalar_lea.vmem %s418_s7, 128  ;;  %p605_p11 = scmp.lt.s32.totalorder %s418_s7, %s418_s7 }
  0x3a   :  { %61 = vadd.xlane.f32.xlu0 %v60_v2  ;;  %501 = vmatpush3.bf16.msra.mxu0 %v500_v5  ;;  %v509_v22 = vpack.c.bf16 %v157_v21, %v156_v20  ;;  %v427_v23 = vld [vmem:[%s741_s3] ss:$0 sm:$0xff]  ;;  %v512_v32 = vpack.c.bf16 %v241_v31, %v240_v30  ;;  %v242_v33 = vld [vmem:[#allocation7 + $0x30] sm:$0xff]  ;;  %v429_v36 = vld [vmem:[%s741_s3 + $0x1] ss:$0 sm:$0xff]  ;;  %p601_p10 = scmp.ne.s32.totalorder %s418_s7, %s600_s8  ;;  %p606_p12 = scmp.lt.s32.totalorder %s600_s8, %s600_s8 }
  0x3b   :  { %502 = vmatprep.subr.bf16.mxu0 %v633_v6  ;;  %507 = vmatpush3.bf16.msra.mxu1 %v506_v19  ;;  %v243_v34 = vld [vmem:[#allocation7 + $0x38] sm:$0xff]  ;;  %v326_v43 = vld [vmem:[#allocation7 + $0x40] sm:$0xff]  ;;  %v327_v44 = vld [vmem:[#allocation7 + $0x48] sm:$0xff] }
  0x3c   :  { %508 = vmatprep.subr.bf16.mxu1 %v633_v6  ;;  %v515_v35 = vpack.c.bf16 %v243_v34, %v242_v33  ;;  %v518_v45 = vpack.c.bf16 %v327_v44, %v326_v43  ;;  %v328_v46 = vld [vmem:[#allocation7 + $0x50] sm:$0xff]  ;;  %v329_v47 = vld [vmem:[#allocation7 + $0x58] sm:$0xff]  ;;  %p607_p13 = por %p606_p12, %p605_p11 }
  0x3d   :  { %v521_v48 = vpack.c.bf16 %v329_v47, %v328_v46  ;;  %v431_v49 = vld [vmem:[%s741_s3 + $0x2] ss:$0 sm:$0xff]  ;;  %v433_v56 = vld [vmem:[%s741_s3 + $0x3] ss:$0 sm:$0xff] }
  0x3e   :  { %504 = vmatpush3.bf16.msra.mxu0 %v503_v9  ;;  %p608_p0 = pnand %p607_p13, %p601_p10 }
  0x3f   :  { %511 = vmatprep.subr.bf16.mxu0 %v633_v6  ;;  %510 = vmatpush3.bf16.msra.mxu1 %v509_v22 }
  0x40   :  { %517 = vmatprep.subr.bf16.mxu1 %v633_v6 }
  0xc7   :  { %v62_v11 = vpop.xlane.xlu0 %61 }
  0xc8   :  { %v64_v12 = vmul.f32 0.03125, %v62_v11 }
  0xca   :  { %v65_v13 = vadd.f32 1e-08, %v64_v12 }
  0xcc   :  { %532 = vrsqrt.f32 %v65_v13 }
  0xd6   :  { %v533_v14 = vpop.eup %532 }
  0xd7   :  { %v67_v15 = vmul.f32 0.25, %v533_v14 }
  0xd9   :  { %v68_v16 = vmul.f32 %v67_v15, %v57_v0 }
  0xdb   :  { %464 = vmatmul.mubr.msk.f32.vlgmr.msra.gmra.mrb[0].mxu0 %vm59_vm0, %v68_v16 }
  0xdc   :  { %485 = vmatprep.mubr.msk.f32.mxu0 %vm634_vm1, %v635_v10  ;;  %513 = vmatpush3.bf16.msra.mxu0 %v512_v32 }
  0xdd   :  { %514 = vmatprep.subr.bf16.mxu0 %v633_v6 }
  0xe0   :  { %516 = vmatpush3.bf16.msra.mxu0 %v515_v35 }
 0x1ae   :  { %v147_v24 = vpop.f32.mrb[0].mxu0 }
 0x1af   :  { %v148_v25 = vadd.f32 %v427_v23, %v147_v24  ;;  %v465_v26 = vpop.f32.mrb[1].mxu0 }
 0x1b1   :  { %v151_v27 = vmul.f32 0.2, %v148_v25 }
 0x1b3   :  { %v152_v28 = vmax.f32 %v148_v25, %v151_v27 }
 0x1b5   :  { %v153_v29 = vmul.f32 0.25, %v152_v28 }
 0x1b7   :  { %475 = vmatmul.mubr.msk.f32.vlgmr.msra.gmra.mrb[0].mxu1 %vm59_vm0, %v153_v29 }
 0x1b8   :  { %496 = vmatprep.mubr.msk.f32.mxu1 %vm634_vm1, %v635_v10  ;;  %519 = vmatpush3.bf16.msra.mxu1 %v518_v45 }
 0x1b9   :  { %520 = vmatprep.subr.bf16.mxu1 %v633_v6 }
 0x1bc   :  { %522 = vmatpush3.bf16.msra.mxu1 %v521_v48 }
 0x28a   :  { %v232_v37 = vpop.f32.mrb[0].mxu1 }
 0x28b   :  { %v233_v38 = vadd.f32 %v429_v36, %v232_v37  ;;  %v476_v39 = vpop.f32.mrb[1].mxu1 }
 0x28d   :  { %v236_v40 = vmul.f32 0.2, %v233_v38 }
 0x28f   :  { %v237_v41 = vmax.f32 %v233_v38, %v236_v40 }
 0x291   :  { %v238_v42 = vmul.f32 0.25, %v237_v41 }
 0x293   :  { %486 = vmatmul.mubr.msk.f32.vlgmr.msra.gmra.mrb[2].mxu0 %vm59_vm0, %v238_v42 }
 0x366   :  { %v318_v50 = vpop.f32.mrb[2].mxu0 }
 0x367   :  { %v319_v51 = vadd.f32 %v431_v49, %v318_v50  ;;  %v487_v52 = vpop.f32.mrb[3].mxu0 }
 0x369   :  { %v322_v53 = vmul.f32 0.2, %v319_v51 }
 0x36b   :  { %v323_v54 = vmax.f32 %v319_v51, %v322_v53 }
 0x36d   :  { %v324_v55 = vmul.f32 0.25, %v323_v54 }
 0x36f   :  { %497 = vmatmul.mubr.msk.f32.vlgmr.msra.gmra.mrb[2].mxu1 %vm59_vm0, %v324_v55 }
 0x442   :  { %v404_v57 = vpop.f32.mrb[2].mxu1 }
 0x443   :  { %v405_v58 = vadd.f32 %v433_v56, %v404_v57  ;;  %v498_v59 = vpop.f32.mrb[3].mxu1 }
 0x445   :  { %v408_v60 = vmul.f32 0.2, %v405_v58 }
 0x447   :  { %v409_v61 = vmax.f32 %v405_v58, %v408_v60 }
 0x449   :  { %410 = vst.msk [vmem:[#allocation8] sm:$0xff] %vm59_vm0, %v409_v61 }
 0x44a   :  { %611 = shalt.err (!%p608_p0)
}
 0x44b   :  { %s612_s3 = scalar_lea.hbm %s742_s4, 128 }
 0x44c   :  { %p613_p1 = scmp.ne.s32.totalorder %s742_s4, %s612_s3  ;;  %p616_p2 = scmp.lt.u32.totalorder %s612_s3, %s742_s4 }
 0x44e   :  { %p618_p3 = pnand %p616_p2, %p613_p1 }
 0x450   :  { %621 = shalt.err (!%p618_p3)
}
 0x451   :  { %420 = dma.vmem_to_hbm [thread:$0]  %s418_s7, 128, %s742_s4, [#allocation4]  }
 0x452   :  { %626 = dma.done.wait [#allocation4], 128  }
 0x453   :  { %627 = vsyncadd [#allocation4], 4294967168 }
 0x454   :  { %424 = vsyncpa [#allocation3], 1 }
 0x455   :  { %425 = vsyncpa [#allocation6], 1 }
 0x456   :  { %426 = vsyncpa [#allocation4], 1 }

</bundles_post_ra>
